<compile_context>
chip_gen: v5e
topology: v5e:2x2
jax: 0.10.0
libtpu: 0.0.40
codegen_flags: <defaults>
</compile_context>

<pallas_src>
import functools

import jax
import jax.numpy as jnp
from jax.experimental import pallas as pl
from jax.experimental.pallas import tpu as pltpu

_LANE = 128
_SUBLANE = 8


def _round_up(n, m):
    return ((n + m - 1) // m) * m


# ----------------------------------------------------------------------------
# Kernel: dot -> relu -> dot(+bias) -> relu -> dot(+bias)
# bf16 MXU inputs, f32 accumulation / elementwise, f32 output.
# ----------------------------------------------------------------------------
def _mlp3_kernel(x_ref, w1_ref, w2_ref, b2_ref, w3_ref, b3_ref, o_ref):
    # layer1: Linear(no bias) -> ReLU            (BN1 folded into w2/b2 at prep)
    h = jnp.dot(x_ref[...].astype(jnp.bfloat16), w1_ref[...],
                preferred_element_type=jnp.float32)
    h = jnp.maximum(h, 0.0)
    # layer2: Linear (BN1-folded) -> ReLU        (BN2 folded into w3/b3 at prep)
    h = jnp.dot(h.astype(jnp.bfloat16), w2_ref[...],
                preferred_element_type=jnp.float32) + b2_ref[...]
    h = jnp.maximum(h, 0.0)
    # layer3: Linear (BN2-folded)
    o_ref[...] = (jnp.dot(h.astype(jnp.bfloat16), w3_ref[...],
                          preferred_element_type=jnp.float32) + b3_ref[...])


# ----------------------------------------------------------------------------
# One-time parameter prep: fold eval-mode BN into the next Linear, cast the
# folded weights to bf16 (MXU-native on v5e/v6e/v7x).  Biases stay f32.
# Run ONCE, outside the hot path.  No padding — full-array blocks are legal.
# ----------------------------------------------------------------------------
def prepare_params(params, eps=1e-5):
    w1, (g1, be1, rm1, rv1), w2, (g2, be2, rm2, rv2), w3 = params

    # eval-mode BN as per-feature scale/shift (f32, exact fold)
    s1 = g1 / jnp.sqrt(rv1 + eps)
    sh1 = be1 - rm1 * s1
    s2 = g2 / jnp.sqrt(rv2 + eps)
    sh2 = be2 - rm2 * s2

    # fold the affine that sits *after* each ReLU into the following Linear
    w2f = s1[:, None] * w2
    b2 = sh1 @ w2
    w3f = s2[:, None] * w3
    b3 = sh2 @ w3

    return (w1.astype(jnp.bfloat16),
            w2f.astype(jnp.bfloat16),
            b2.reshape(1, -1).astype(jnp.float32),
            w3f.astype(jnp.bfloat16),
            b3.reshape(1, -1).astype(jnp.float32))


# ----------------------------------------------------------------------------
# Batch-tile selection: multiple of 8 (sublane), capped by a conservative
# VMEM budget (safe under v7x's 32 MiB scoped default) and split so the
# batch grid has >= 2 steps when possible (shards across v7x's 2 TensorCores).
# ----------------------------------------------------------------------------
def _pick_batch_tile(B, in_dim, h2, hid, out_dim, tb_cap=2048,
                     vmem_budget_bytes=16 << 20):
    per_row = (2 * 4 * in_dim          # f32 x tile, double-buffered
               + 2 * 4 * out_dim       # f32 out tile, double-buffered
               + 6 * (h2 + hid)        # f32 intermediates + bf16 copies
               + 2 * in_dim)           # bf16 copy of x tile
    tb_vmem = max(_SUBLANE, (vmem_budget_bytes // per_row) // _SUBLANE * _SUBLANE)
    tb_split = _round_up(pl.cdiv(B, 2), _SUBLANE)   # >= 2 grid steps for v7x
    return max(_SUBLANE, min(tb_cap, tb_vmem, tb_split))


# ----------------------------------------------------------------------------
# Forward wrapper: 1-D batch grid, weights resident in VMEM (single-buffered),
# unpadded x / output, cdiv grid for the ragged batch tail.
# ----------------------------------------------------------------------------
def adversarial_mlp3(x, prepped, *, tb_cap=2048):
    """Fused eval-mode forward.  x: (B, input_dim) float32 -> (B, output_dim) f32."""
    w1, w2, b2, w3, b3 = prepped
    B, in_dim = x.shape
    h2 = w1.shape[1]
    hid = w2.shape[1]
    out_dim = w3.shape[1]

    TB = _pick_batch_tile(B, in_dim, h2, hid, out_dim, tb_cap)
    grid = (pl.cdiv(B, TB),)

    flops = 2 * B * (in_dim * h2 + h2 * hid + hid * out_dim)
    bytes_accessed = (4 * B * in_dim                                   # f32 x stream
                      + 2 * (in_dim * h2 + h2 * hid + hid * out_dim)   # bf16 weights
                      + 4 * (hid + out_dim)                            # f32 biases
                      + 4 * B * out_dim)                               # f32 output

    resident = pl.Buffered(1)   # constant index_map -> no double-buffering needed

    out = pl.pallas_call(
        _mlp3_kernel,
        out_shape=jax.ShapeDtypeStruct((B, out_dim), jnp.float32),
        grid_spec=pltpu.PrefetchScalarGridSpec(
            num_scalar_prefetch=0,
            grid=grid,
            in_specs=[
                pl.BlockSpec((TB, in_dim), lambda i: (i, 0)),          # x tile
                pl.BlockSpec((in_dim, h2), lambda i: (0, 0),
                             pipeline_mode=resident),                  # w1 (resident)
                pl.BlockSpec((h2, hid), lambda i: (0, 0),
                             pipeline_mode=resident),                  # w2 (BN1-folded)
                pl.BlockSpec((1, hid), lambda i: (0, 0),
                             pipeline_mode=resident),                  # bias2
                pl.BlockSpec((hid, out_dim), lambda i: (0, 0),
                             pipeline_mode=resident),                  # w3 (BN2-folded)
                pl.BlockSpec((1, out_dim), lambda i: (0, 0),
                             pipeline_mode=resident),                  # bias3
            ],
            out_specs=pl.BlockSpec((TB, out_dim), lambda i: (i, 0)),
        ),
        compiler_params=pltpu.CompilerParams(
            dimension_semantics=("parallel",)),
        cost_estimate=pl.CostEstimate(
            flops=flops, transcendentals=0, bytes_accessed=bytes_accessed),
    )(x, w1, w2, b2, w3, b3)

    return out


# ----------------------------------------------------------------------------
# Synthetic parameters + pure-JAX f32 reference (for the sanity check)
# ----------------------------------------------------------------------------
def init_params(key, input_dim, output_dim, hidden_dim=128):
    """Linear weights stored transposed: (in_features, out_features)."""
    h2 = hidden_dim * 2
    k = jax.random.split(key, 9)
    w1 = jax.random.normal(k[0], (input_dim, h2), jnp.float32) * 0.05
    w2 = jax.random.normal(k[1], (h2, hidden_dim), jnp.float32) * 0.05
    w3 = jax.random.normal(k[2], (hidden_dim, output_dim), jnp.float32) * 0.05
    bn1 = (jax.random.normal(k[3], (h2,), jnp.float32) * 0.1 + 1.0,           # gamma
           jax.random.normal(k[4], (h2,), jnp.float32) * 0.1,                 # beta
           jax.random.normal(k[5], (h2,), jnp.float32) * 0.1,                 # running_mean
           jnp.abs(jax.random.normal(k[6], (h2,), jnp.float32)) * 0.1 + 1.0)  # running_var
    bn2 = (jax.random.normal(k[7], (hidden_dim,), jnp.float32) * 0.1 + 1.0,
           jax.random.normal(k[8], (hidden_dim,), jnp.float32) * 0.1,
           jnp.zeros((hidden_dim,), jnp.float32),
           jnp.ones((hidden_dim,), jnp.float32))
    return (w1, bn1, w2, bn2, w3)


def reference_forward(x, params):
    # eval mode: grad-reverse and dropout are identity; BN uses running stats.
    w1, (g1, be1, rm1, rv1), w2, (g2, be2, rm2, rv2), w3 = params
    eps = 1e-5
    h = jnp.maximum(x @ w1, 0.0)
    h = (h - rm1) / jnp.sqrt(rv1 + eps) * g1 + be1
    h = jnp.maximum(h @ w2, 0.0)
    h = (h - rm2) / jnp.sqrt(rv2 + eps) * g2 + be2
    return h @ w3


if __name__ == "__main__":
    key = jax.random.PRNGKey(0)
    kx, kp = jax.random.split(key)

    batch, input_dim, hidden_dim, output_dim = 16, 32, 32, 8
    x = jax.random.normal(kx, (batch, input_dim), jnp.float32)
    params = init_params(kp, input_dim, output_dim, hidden_dim)

    # one-time prep (BN fold + bf16 cast) outside the hot path
    prepped = jax.block_until_ready(prepare_params(params))

    forward = jax.jit(functools.partial(adversarial_mlp3))
    out = jax.block_until_ready(forward(x, prepped))

    ref = reference_forward(x, params)
    assert out.shape == (batch, output_dim)
    # bf16 MXU inputs with f32 accumulation -> loosen tolerance vs f32 reference
    assert jnp.allclose(out, ref, atol=2e-2, rtol=2e-2), (
        f"max abs err {jnp.max(jnp.abs(out - ref))}")

    print("KERNEL_OK")
</pallas_src>

<mosaic_0001>
module attributes {stable_mosaic.version = 11 : i64} {
  func.func @_mlp3_kernel(%arg0: i32, %arg1: memref<8x32xf32, #tpu.memory_space<vmem>>, %arg2: memref<32x64xbf16, #tpu.memory_space<vmem>>, %arg3: memref<64x32xbf16, #tpu.memory_space<vmem>>, %arg4: memref<1x32xf32, #tpu.memory_space<vmem>>, %arg5: memref<32x8xbf16, #tpu.memory_space<vmem>>, %arg6: memref<1x8xf32, #tpu.memory_space<vmem>>, %arg7: memref<8x8xf32, #tpu.memory_space<vmem>>) attributes {dimension_semantics = [#tpu.dimension_semantics<parallel>], iteration_bounds = array<i64: 2>, scalar_prefetch = 0 : i64, scratch_operands = 0 : i64, tpu.core_type = #tpu.core_type<tc>, window_params = [{transform_indices = @transform_0, window_bounds = array<i64: 8, 32>}, {pipeline_mode = #tpu.pipeline_mode<synchronous>, transform_indices = @transform_1, window_bounds = array<i64: 32, 64>}, {pipeline_mode = #tpu.pipeline_mode<synchronous>, transform_indices = @transform_2, window_bounds = array<i64: 64, 32>}, {pipeline_mode = #tpu.pipeline_mode<synchronous>, transform_indices = @transform_3, window_bounds = array<i64: 1, 32>}, {pipeline_mode = #tpu.pipeline_mode<synchronous>, transform_indices = @transform_4, window_bounds = array<i64: 32, 8>}, {pipeline_mode = #tpu.pipeline_mode<synchronous>, transform_indices = @transform_5, window_bounds = array<i64: 1, 8>}, {transform_indices = @transform_6, window_bounds = array<i64: 8, 8>}]} {
    %c0 = arith.constant 0 : index
    %c0_0 = arith.constant 0 : index
    %0 = vector.load %arg1[%c0, %c0_0] : memref<8x32xf32, #tpu.memory_space<vmem>>, vector<8x32xf32>
    %1 = arith.truncf %0 : vector<8x32xf32> to vector<8x32xbf16>
    %c0_1 = arith.constant 0 : index
    %c0_2 = arith.constant 0 : index
    %2 = vector.load %arg2[%c0_1, %c0_2] : memref<32x64xbf16, #tpu.memory_space<vmem>>, vector<32x64xbf16>
    %cst = arith.constant dense<0.000000e+00> : vector<8x64xf32>
    %3 = tpu.matmul %1, %2, %cst {dimension_numbers = #tpu.dot_dimension_numbers<[1], [0], [0], [1], [0, 0, 1, 1], [], []>} : vector<8x32xbf16>, vector<32x64xbf16>, vector<8x64xf32> -> vector<8x64xf32>
    %cst_3 = arith.constant 0.000000e+00 : f32
    %4 = vector.broadcast %cst_3 : f32 to vector<8x64xf32>
    %5 = arith.maximumf %3, %4 : vector<8x64xf32>
    %6 = arith.truncf %5 : vector<8x64xf32> to vector<8x64xbf16>
    %c0_4 = arith.constant 0 : index
    %c0_5 = arith.constant 0 : index
    %7 = vector.load %arg3[%c0_4, %c0_5] : memref<64x32xbf16, #tpu.memory_space<vmem>>, vector<64x32xbf16>
    %cst_6 = arith.constant dense<0.000000e+00> : vector<8x32xf32>
    %8 = tpu.matmul %6, %7, %cst_6 {dimension_numbers = #tpu.dot_dimension_numbers<[1], [0], [0], [1], [0, 0, 1, 1], [], []>} : vector<8x64xbf16>, vector<64x32xbf16>, vector<8x32xf32> -> vector<8x32xf32>
    %c0_7 = arith.constant 0 : index
    %c0_8 = arith.constant 0 : index
    %9 = vector.load %arg4[%c0_7, %c0_8] : memref<1x32xf32, #tpu.memory_space<vmem>>, vector<1x32xf32>
    %10 = vector.broadcast %9 : vector<1x32xf32> to vector<8x32xf32>
    %11 = arith.addf %8, %10 : vector<8x32xf32>
    %cst_9 = arith.constant 0.000000e+00 : f32
    %12 = vector.broadcast %cst_9 : f32 to vector<8x32xf32>
    %13 = arith.maximumf %11, %12 : vector<8x32xf32>
    %14 = arith.truncf %13 : vector<8x32xf32> to vector<8x32xbf16>
    %c0_10 = arith.constant 0 : index
    %c0_11 = arith.constant 0 : index
    %15 = vector.load %arg5[%c0_10, %c0_11] : memref<32x8xbf16, #tpu.memory_space<vmem>>, vector<32x8xbf16>
    %cst_12 = arith.constant dense<0.000000e+00> : vector<8x8xf32>
    %16 = tpu.matmul %14, %15, %cst_12 {dimension_numbers = #tpu.dot_dimension_numbers<[1], [0], [0], [1], [0, 0, 1, 1], [], []>} : vector<8x32xbf16>, vector<32x8xbf16>, vector<8x8xf32> -> vector<8x8xf32>
    %c0_13 = arith.constant 0 : index
    %c0_14 = arith.constant 0 : index
    %17 = vector.load %arg6[%c0_13, %c0_14] : memref<1x8xf32, #tpu.memory_space<vmem>>, vector<1x8xf32>
    %18 = vector.broadcast %17 : vector<1x8xf32> to vector<8x8xf32>
    %19 = arith.addf %16, %18 : vector<8x8xf32>
    %c0_15 = arith.constant 0 : index
    %c0_16 = arith.constant 0 : index
    %20 = vector.load %arg7[%c0_15, %c0_16] : memref<8x8xf32, #tpu.memory_space<vmem>>, vector<8x8xf32>
    tpu.vector_store %arg7[%c0_15, %c0_16], %19 {strides = array<i32>} : memref<8x8xf32, #tpu.memory_space<vmem>>, vector<8x8xf32>,
    return
  }
  func.func @transform_0(%arg0: i32) -> (i32, i32) {
    %c0_i32 = arith.constant 0 : i32
    %c0_i32_0 = arith.constant 0 : i32
    return %arg0, %c0_i32 : i32, i32
  }
  func.func @transform_1(%arg0: i32) -> (i32, i32) {
    %c0_i32 = arith.constant 0 : i32
    %c0_i32_0 = arith.constant 0 : i32
    %c0_i32_1 = arith.constant 0 : i32
    return %c0_i32, %c0_i32_0 : i32, i32
  }
  func.func @transform_2(%arg0: i32) -> (i32, i32) {
    %c0_i32 = arith.constant 0 : i32
    %c0_i32_0 = arith.constant 0 : i32
    %c0_i32_1 = arith.constant 0 : i32
    return %c0_i32, %c0_i32_0 : i32, i32
  }
  func.func @transform_3(%arg0: i32) -> (i32, i32) {
    %c0_i32 = arith.constant 0 : i32
    %c0_i32_0 = arith.constant 0 : i32
    %c0_i32_1 = arith.constant 0 : i32
    return %c0_i32, %c0_i32_0 : i32, i32
  }
  func.func @transform_4(%arg0: i32) -> (i32, i32) {
    %c0_i32 = arith.constant 0 : i32
    %c0_i32_0 = arith.constant 0 : i32
    %c0_i32_1 = arith.constant 0 : i32
    return %c0_i32, %c0_i32_0 : i32, i32
  }
  func.func @transform_5(%arg0: i32) -> (i32, i32) {
    %c0_i32 = arith.constant 0 : i32
    %c0_i32_0 = arith.constant 0 : i32
    %c0_i32_1 = arith.constant 0 : i32
    return %c0_i32, %c0_i32_0 : i32, i32
  }
  func.func @transform_6(%arg0: i32) -> (i32, i32) {
    %c0_i32 = arith.constant 0 : i32
    %c0_i32_0 = arith.constant 0 : i32
    return %arg0, %c0_i32 : i32, i32
  }
}

</mosaic_0001>

<bundles_post_ra>
// kernel: adversarial_mlp3.1
= control target key start
LH: loop header
LB: loop body
LE: loop exit
PB: predicated region body
PF: predicated region fallthrough
CT: control target
= control target key end

     0   :  { %s536_s21 = smov 0   ;;  %s592_s0 = inlined_call_operand.vmem [shape: f32[16,32], index: 0, kind: input, shape index: {}]   ;;  %s593_s1 = inlined_call_operand.vmem [shape: bf16[32,64], index: 1, kind: input, shape index: {}]   ;;  %s594_s2 = inlined_call_operand.vmem [shape: bf16[64,32], index: 2, kind: input, shape index: {}]   ;;  %s595_s3 = inlined_call_operand.vmem [shape: f32[1,32], index: 3, kind: input, shape index: {}]   ;;  %s596_s4 = inlined_call_operand.vmem [shape: bf16[32,8], index: 4, kind: input, shape index: {}]   ;;  %s597_s5 = inlined_call_operand.vmem [shape: f32[1,8], index: 5, kind: input, shape index: {}]   ;;  %s598_s6 = inlined_call_operand.vmem [shape: f32[16,8], index: 6, kind: output, shape index: {}]  }
   0x1 LB: > { %s431_s22 = sadd.s32 4294967295, %s499_s21   ;;  %p435_p0 = scmp.ge.s32.totalorder %s499_s21, 1  ;;  %s499_s21 = sphi %s536_s21, %s16_s21  }
   0x2   : > { %p211_p1 = scmp.lt.s32.totalorder %s499_s21, 3 }
   0x4   : > { %p212_p2 = pnand %p435_p0, %p211_p1 }
   0x5   : > { %p239_p3 = scmp.lt.s32.totalorder (!%p212_p2), %s431_s22, 1 }
   0x6   : > { %215 = sbr.rel (%p212_p2) target bundleno = 421 (0x1a5), region = 44 }
   0xb   : > { %v476_v0 = vld [vmem:[%s593_s1 + $0x8] sm:$0xff]  ;;  %v480_v1 = vld [vmem:[%s594_s2 + $0x18] sm:$0xff]  ;;  %v475_v2 = vld [vmem:[%s593_s1] sm:$0xff]  ;;  %s600_s22 = smov (!%p239_p3, %s431_s22), 1  ;;  %vm266_vm0 = vcmask 261120   ;;  %vm321_vm1 = vcmask 523264  }
   0xc   : > { %276 = vmatpush.bf16.msra.mxu0 %v476_v0  ;;  %329 = vmatpush.bf16.msra.mxu1 %v480_v1  ;;  %v479_v3 = vld [vmem:[%s594_s2 + $0x10] sm:$0xff]  ;;  %s436_s7 = sshll.u32 %s600_s22, 3  ;;  %v478_v5 = vld [vmem:[%s594_s2 + $0x8] sm:$0xff]  ;;  %v477_v7 = vld [vmem:[%s594_s2] sm:$0xff]  ;;  %vm376_vm2 = vcmask 64512  }
   0xd   : > { %s242_s10 = scalar_lea.vmem %s592_s0, %s436_s7  ;;  %v482_v12 = vld [vmem:[%s596_s4 + $0x8] sm:$0xff]  ;;  %v481_v13 = vld [vmem:[%s596_s4] sm:$0xff]  ;;  %s246_s27 = scalar_lea.vmem %s598_s6, %s436_s7 }
   0xe   : > { %v248_v4 = vld [vmem:[%s242_s10] sm:$0xff]  ;;  %369 = vmatpush.bf16.msra.mxu2 %v482_v12 }
   0xf   : > { %v249_v6 = vpack.c.bf16 %v248_v4, %v248_v4  ;;  %v491_v14 = vld [vmem:[%s595_s3] ss:$0 sm:$0xff] }
  0x10   : > { %277 = vmatpush.bf16.msra.mxu0 %v475_v2  ;;  %330 = vmatpush.bf16.msra.mxu1 %v479_v3  ;;  %v492_v20 = vld [vmem:[%s597_s5] ss:$0 sm:$0xff] }
  0x12   : > { %370 = vmatpush.bf16.msra.mxu2 %v481_v13 }
  0x13   : > { %446 = vmatmul.msk.bf16.vlgmr.msra.gmra.mxu0 %vm266_vm0, %v249_v6 }
  0x14   : > { %331 = vmatpush.bf16.msra.mxu1 %v478_v5 }
  0x18   : > { %332 = vmatpush.bf16.msra.mxu1 %v477_v7 }
  0x90   : > { %v279_v8 = vpop.f32.mrf.mxu0 }
  0x91   : > { %v283_v9 = vmax.f32 %v279_v8, 0.0 }
  0x93   : > { %v284_v10 = vpack.c.bf16 %v283_v9, %v283_v9 }
  0x95   : > { %463 = vmatmul.msk.bf16.vlgmr.msra.gmra.mxu1 %vm321_vm1, %v284_v10 }
  0x98   : > { %v281_v11 = vpop.f32.mrf.mxu0 }
 0x112   : > { %v334_v15 = vpop.f32.mrf.mxu1 }
 0x113   : > { %v335_v16 = vadd.f32 %v491_v14, %v334_v15 }
 0x115   : > { %v338_v17 = vmax.f32 %v335_v16, 0.0 }
 0x117   : > { %v339_v18 = vpack.c.bf16 %v338_v17, %v338_v17 }
 0x119   : > { %472 = vmatmul.msk.bf16.vlgmr.msra.gmra.mxu2 %vm266_vm0, %v339_v18 }
 0x11a   : > { %v336_v19 = vpop.f32.mrf.mxu1 }
 0x19c   : > { %v372_v21 = vpop.f32.mrf.mxu2 }
 0x19d   : > { %v373_v22 = vadd.f32 %v492_v20, %v372_v21 }
 0x19f   : > { %377 = vst.msk [vmem:[%s246_s27] sm:$0xff] %vm376_vm2, %v373_v22 }
 0x1a4   : > { %v374_v23 = vpop.f32.mrf.mxu2 }
 0x1a5 PF: > { %s16_s21 = sadd.s32 1, %s499_s21  }
 0x1a6   : > { %p13_p4 = scmp.ge.s32.totalorder %s16_s21, 4  }
 0x1a8   :  { %15 = sbr.rel (!%p13_p4) target bundleno = 1 (0x1), region = 74 }

</bundles_post_ra>
